<compile_context>
chip_gen: v7x
topology: tpu7x:2x2x1
jax: 0.10.0
libtpu: 0.0.40
codegen_flags: <defaults>
</compile_context>

<pallas_src>
import numpy as np
import jax
import jax.numpy as jnp
from jax import lax
from jax.experimental import pallas as pl
from jax.experimental.pallas import tpu as pltpu

LEAKY_SLOPE = 0.2
KSIZE = 3


# ---------------------------------------------------------------------------
# cached_conv style helpers (non-streaming path).
# ---------------------------------------------------------------------------
def get_padding(kernel_size, stride=1, dilation=1, mode="centered"):
    """cc.get_padding for the non-streaming path."""
    if kernel_size == 1:
        return (0, 0)
    p = (kernel_size - 1) * dilation + 1 - stride
    if p < 0:
        # TODO(synk): cached_conv trims with a negative right pad when stride > kernel size.
        raise NotImplementedError("stride > kernel_size not supported in this demo")
    if mode == "centered":
        return ((p + 1) // 2, p // 2)
    if mode == "causal":
        return (p, 0)
    raise ValueError(f"padding mode {mode} not supported")


def _hann_periodic(n):
    # torch.hann_window(n) with the default periodic=True
    k = jnp.arange(n, dtype=jnp.float32)
    return 0.5 * (1.0 - jnp.cos(2.0 * jnp.pi * k / n))


def _tap_selection_matrices(l_in, l_out, stride, pad_left, k_size=KSIZE):
    """S[k, t, j] = 1 iff j == stride*t + k - pad_left (k-th conv tap for output position t).

    Folds the zero padding and the stride into a 0/1 matrix so the kernel only needs
    matmuls + a lane concatenation (no pads / strided slices inside the kernel)."""
    S = np.zeros((k_size, l_out, l_in), np.float32)
    t = np.arange(l_out)
    for k in range(k_size):
        src = stride * t + k - pad_left
        ok = (src >= 0) & (src < l_in)
        S[k, t[ok], src[ok]] = 1.0
    return jnp.asarray(S)


def _noise_synth_matrices(noise_bands, data_size, target_size):
    """Fold amp_to_impulse_response + fft_convolve's rfft/irfft (all linear / R-linear over the
    tiny band / target_size axes) into small dense matrices, block-diagonal over data_size."""
    nb, T = int(noise_bands), int(target_size)
    N = 2 * (nb - 1)                                   # irfft "filter_size"
    assert N <= T, "target_size must be >= 2*(noise_bands - 1)"
    # amp -> impulse response (faithful to rave amp_to_impulse_response), built on a basis
    ir = jnp.fft.irfft(jnp.eye(nb, dtype=jnp.complex64), axis=-1)           # (nb, N)
    ir = jnp.roll(ir, N // 2, axis=-1) * _hann_periodic(N)[None, :]
    ir = jnp.pad(ir, ((0, 0), (0, T - N)))
    ir = jnp.roll(ir, -(N // 2), axis=-1)                                   # (nb, T)
    # fft_convolve: kernel branch = rfft(left-pad(ir)), signal branch = rfft(right-pad(sig)),
    # output = irfft(X*Y)[..., T:].  rfft/irfft are R-linear -> real basis matrices.
    ker = jnp.fft.rfft(jnp.pad(ir, ((0, 0), (T, 0))), axis=-1)              # (nb, T+1) cplx
    sig = jnp.fft.rfft(jnp.pad(jnp.eye(T, dtype=jnp.float32), ((0, 0), (0, T))), axis=-1)
    eye_c = jnp.eye(T + 1, dtype=jnp.complex64)
    inv_r = jnp.fft.irfft(eye_c, n=2 * T, axis=-1)[:, T:]                   # (T+1, T)
    inv_i = jnp.fft.irfft(1j * eye_c, n=2 * T, axis=-1)[:, T:]              # (T+1, T)

    def bd(m):  # block-diagonal over data_size (channel layout is data_size-major)
        return jnp.kron(jnp.eye(data_size, dtype=jnp.float32), m.astype(jnp.float32))

    return (bd(jnp.real(ker)), bd(jnp.imag(ker)),
            bd(jnp.real(sig)), bd(jnp.imag(sig)),
            bd(inv_r), bd(inv_i))


# ---------------------------------------------------------------------------
# Pallas kernel: the whole NoiseGenerator forward for one batch element.
# ---------------------------------------------------------------------------
def _make_kernel(num_layers):
    def kernel(*refs):
        x_ref = refs[0]
        conv_refs = refs[1:1 + 3 * num_layers]
        (ker_r, ker_i, sig_r, sig_i, inv_r, inv_i, u_ref, o_ref) = refs[1 + 3 * num_layers:]

        h = x_ref[0]                                            # (L0, C0) f32, channels-last
        for i in range(num_layers):
            s_ref, w_ref, b_ref = conv_refs[3 * i:3 * i + 3]
            hm = h.astype(w_ref.dtype)
            # strided-conv taps via 0/1 selection matmuls (padding + stride folded in),
            # concatenated lane-wise -> ONE fused (L_out, 3C) x (3C, C_out) MXU matmul.
            taps = [
                jnp.dot(s_ref[k], hm,
                        preferred_element_type=jnp.float32).astype(w_ref.dtype)
                for k in range(s_ref.shape[0])
            ]
            im2col = jnp.concatenate(taps, axis=-1)             # (L_out, K*C_in)
            h = jnp.dot(im2col, w_ref[...],
                        preferred_element_type=jnp.float32) + b_ref[0]
            if i != num_layers - 1:
                h = jnp.where(h > 0, h, LEAKY_SLOPE * h)        # LeakyReLU(0.2)

        # amp = mod_sigmoid(h - 5) = 2*sigmoid(h-5)**2.3 + 1e-7   (EUP exp/log path)
        z = h - 5.0
        s = 1.0 / (1.0 + jnp.exp(-z))
        amp = 2.0 * jnp.exp(2.3 * jnp.log(s)) + 1e-7            # (L2, data_size*noise_bands)

        # amp -> rfft(left-pad(impulse_response))   (fused linear map, block-diag over data_size)
        y_r = jnp.dot(amp, ker_r[...], preferred_element_type=jnp.float32)
        y_i = jnp.dot(amp, ker_i[...], preferred_element_type=jnp.float32)

        noise = 2.0 * u_ref[0] - 1.0                            # (L2, data_size*target_size)
        x_r = jnp.dot(noise, sig_r[...], preferred_element_type=jnp.float32)
        x_i = jnp.dot(noise, sig_i[...], preferred_element_type=jnp.float32)

        # complex spectrum product, then fused irfft + "keep second half"
        z_r = x_r * y_r - x_i * y_i
        z_i = x_r * y_i + x_i * y_r
        out = (jnp.dot(z_r, inv_r[...], preferred_element_type=jnp.float32) +
               jnp.dot(z_i, inv_i[...], preferred_element_type=jnp.float32))
        o_ref[0] = out.astype(o_ref.dtype)                      # (L2, data_size*target_size)

    return kernel


def noise_generator_forward(x_ncl, conv_w, conv_b, ratios, data_size, noise_bands,
                            u_noise, padding_mode="centered",
                            matmul_dtype=jnp.bfloat16):
    """x_ncl: (B, in_size, L) like the PyTorch module.  conv_w[i]: (C_out, C_in, 3) torch layout.
    u_noise: uniform[0,1) noise of shape (B, L//prod(ratios), data_size, prod(ratios))."""
    B, c0, l0 = x_ncl.shape
    num_layers = len(ratios)
    target_size = int(np.prod(ratios))

    x_blc = jnp.transpose(x_ncl, (0, 2, 1)).astype(jnp.float32)   # channels-last for the kernel

    inputs = [x_blc]
    in_specs = [pl.BlockSpec((1, l0, c0), lambda b: (b, 0, 0))]
    l_in = l0
    for i, r in enumerate(ratios):
        w = conv_w[i]                                             # (C_out, C_in, K)
        c_out, c_in, k = w.shape
        p_l, p_r = get_padding(k, r, mode=padding_mode)
        l_out = (l_in + p_l + p_r - k) // r + 1
        sel = _tap_selection_matrices(l_in, l_out, r, p_l, k).astype(matmul_dtype)
        w_cat = jnp.transpose(w, (2, 1, 0)).reshape(k * c_in, c_out).astype(matmul_dtype)
        bias = conv_b[i].reshape(1, c_out).astype(jnp.float32)
        inputs += [sel, w_cat, bias]
        in_specs += [pl.BlockSpec(tuple(sel.shape), lambda b: (0, 0, 0)),
                     pl.BlockSpec(tuple(w_cat.shape), lambda b: (0, 0)),
                     pl.BlockSpec(tuple(bias.shape), lambda b: (0, 0))]
        l_in = l_out
    l_frames = l_in                                               # frame-rate length after convs

    for m in _noise_synth_matrices(noise_bands, data_size, target_size):
        inputs.append(m)
        in_specs.append(pl.BlockSpec(tuple(m.shape), lambda b: (0, 0)))

    assert u_noise.shape == (B, l_frames, data_size, target_size)
    u_flat = u_noise.reshape(B, l_frames, data_size * target_size).astype(jnp.float32)
    inputs.append(u_flat)
    in_specs.append(pl.BlockSpec((1, l_frames, data_size * target_size), lambda b: (b, 0, 0)))

    out_frames = pl.pallas_call(
        _make_kernel(num_layers),
        out_shape=jax.ShapeDtypeStruct((B, l_frames, data_size * target_size), jnp.float32),
        grid_spec=pltpu.PrefetchScalarGridSpec(
            num_scalar_prefetch=0,
            grid=(B,),
            in_specs=in_specs,
            out_specs=pl.BlockSpec((1, l_frames, data_size * target_size),
                                   lambda b: (b, 0, 0)),
        ),
        compiler_params=pltpu.CompilerParams(
            dimension_semantics=("parallel",),      # batch items independent (v7x: 2 TCs/chip)
            vmem_limit_bytes=32 * 1024 * 1024,
        ),
    )(*inputs)

    # (B, T_frames, data_size, target) -> (B, data_size, T_frames*target), as in the module.
    out = out_frames.reshape(B, l_frames, data_size, target_size)
    return jnp.transpose(out, (0, 2, 1, 3)).reshape(B, data_size, l_frames * target_size)


# ---------------------------------------------------------------------------
# Pure-JAX reference (faithful translation of the PyTorch forward).
# ---------------------------------------------------------------------------
def reference_forward(x_ncl, conv_w, conv_b, ratios, data_size, noise_bands,
                      u_noise, padding_mode="centered"):
    target_size = int(np.prod(ratios))
    h = x_ncl.astype(jnp.float32)
    for i, r in enumerate(ratios):
        w = conv_w[i]
        p_l, p_r = get_padding(w.shape[-1], r, mode=padding_mode)
        h = jnp.pad(h, ((0, 0), (0, 0), (p_l, p_r)))
        h = lax.conv_general_dilated(h, w, window_strides=(r,), padding="VALID",
                                     dimension_numbers=("NCH", "OIH", "NCH"))
        h = h + conv_b[i][None, :, None]
        if i != len(ratios) - 1:
            h = jnp.where(h > 0, h, LEAKY_SLOPE * h)
    amp = 2.0 * jax.nn.sigmoid(h - 5.0) ** 2.3 + 1e-7                 # mod_sigmoid
    amp = jnp.transpose(amp, (0, 2, 1))
    b, t, _ = amp.shape
    amp = amp.reshape(b, t, data_size, -1)

    # amp_to_impulse_response
    ir = jnp.fft.irfft(amp.astype(jnp.complex64), axis=-1)
    n = ir.shape[-1]
    ir = jnp.roll(ir, n // 2, axis=-1) * _hann_periodic(n)
    ir = jnp.pad(ir, ((0, 0), (0, 0), (0, 0), (0, target_size - n)))
    ir = jnp.roll(ir, -(n // 2), axis=-1)

    noise = u_noise * 2.0 - 1.0
    # fft_convolve
    sig = jnp.pad(noise, ((0, 0), (0, 0), (0, 0), (0, target_size)))
    ker = jnp.pad(ir, ((0, 0), (0, 0), (0, 0), (target_size, 0)))
    out = jnp.fft.irfft(jnp.fft.rfft(sig) * jnp.fft.rfft(ker), axis=-1)
    out = out[..., out.shape[-1] // 2:]

    out = jnp.transpose(out, (0, 2, 1, 3))
    return out.reshape(out.shape[0], data_size, -1)


if __name__ == "__main__":
    # Small NoiseGenerator config: in_size=16, data_size=2, ratios=(2, 2), noise_bands=3.
    B, in_size, L = 2, 16, 32
    data_size, ratios, noise_bands = 2, (2, 2), 3
    padding_mode = "centered"
    target_size = int(np.prod(ratios))
    l_frames = L // target_size

    key = jax.random.PRNGKey(0)
    kx, ku, kw1, kw2, kb1, kb2 = jax.random.split(key, 6)

    channels = [in_size] * len(ratios) + [data_size * noise_bands]
    conv_w = [0.2 * jax.random.normal(kw1, (channels[1], channels[0], KSIZE), jnp.float32),
              0.2 * jax.random.normal(kw2, (channels[2], channels[1], KSIZE), jnp.float32)]
    conv_b = [0.1 * jax.random.normal(kb1, (channels[1],), jnp.float32),
              0.1 * jax.random.normal(kb2, (channels[2],), jnp.float32)]

    x = jax.random.normal(kx, (B, in_size, L), jnp.float32)           # PyTorch NCL layout
    # torch.rand_like noise, generated once and shared with the reference so we can verify.
    u = jax.random.uniform(ku, (B, l_frames, data_size, target_size), jnp.float32)

    ref = reference_forward(x, conv_w, conv_b, ratios, data_size, noise_bands, u, padding_mode)

    out_f32 = jax.block_until_ready(
        noise_generator_forward(x, conv_w, conv_b, ratios, data_size, noise_bands, u,
                                padding_mode, matmul_dtype=jnp.float32))
    out_bf16 = jax.block_until_ready(
        noise_generator_forward(x, conv_w, conv_b, ratios, data_size, noise_bands, u,
                                padding_mode, matmul_dtype=jnp.bfloat16))

    assert out_f32.shape == (B, data_size, L)
    assert out_bf16.shape == (B, data_size, L)
    scale = float(jnp.max(jnp.abs(ref))) + 1e-12
    err_f32 = float(jnp.max(jnp.abs(out_f32 - ref))) / scale
    err_bf16 = float(jnp.max(jnp.abs(out_bf16 - ref))) / scale
    assert err_f32 < 1e-3, f"f32 kernel mismatch vs reference: {err_f32}"
    assert err_bf16 < 5e-2, f"bf16 kernel mismatch vs reference: {err_bf16}"

    print("KERNEL_OK")
</pallas_src>

<mosaic_0001>
module attributes {stable_mosaic.version = 11 : i64} {
  func.func @kernel(%arg0: i32, %arg1: memref<1x32x16xf32, #tpu.memory_space<vmem>>, %arg2: memref<3x16x32xf32, #tpu.memory_space<vmem>>, %arg3: memref<48x16xf32, #tpu.memory_space<vmem>>, %arg4: memref<1x16xf32, #tpu.memory_space<vmem>>, %arg5: memref<3x8x16xf32, #tpu.memory_space<vmem>>, %arg6: memref<48x6xf32, #tpu.memory_space<vmem>>, %arg7: memref<1x6xf32, #tpu.memory_space<vmem>>, %arg8: memref<6x10xf32, #tpu.memory_space<vmem>>, %arg9: memref<6x10xf32, #tpu.memory_space<vmem>>, %arg10: memref<8x10xf32, #tpu.memory_space<vmem>>, %arg11: memref<8x10xf32, #tpu.memory_space<vmem>>, %arg12: memref<10x8xf32, #tpu.memory_space<vmem>>, %arg13: memref<10x8xf32, #tpu.memory_space<vmem>>, %arg14: memref<1x8x8xf32, #tpu.memory_space<vmem>>, %arg15: memref<1x8x8xf32, #tpu.memory_space<vmem>>) attributes {dimension_semantics = [#tpu.dimension_semantics<parallel>], iteration_bounds = array<i64: 2>, scalar_prefetch = 0 : i64, scratch_operands = 0 : i64, tpu.core_type = #tpu.core_type<tc>, window_params = [{transform_indices = @transform_0, window_bounds = array<i64: 1, 32, 16>}, {pipeline_mode = #tpu.pipeline_mode<synchronous>, transform_indices = @transform_1, window_bounds = array<i64: 3, 16, 32>}, {pipeline_mode = #tpu.pipeline_mode<synchronous>, transform_indices = @transform_2, window_bounds = array<i64: 48, 16>}, {pipeline_mode = #tpu.pipeline_mode<synchronous>, transform_indices = @transform_3, window_bounds = array<i64: 1, 16>}, {pipeline_mode = #tpu.pipeline_mode<synchronous>, transform_indices = @transform_4, window_bounds = array<i64: 3, 8, 16>}, {pipeline_mode = #tpu.pipeline_mode<synchronous>, transform_indices = @transform_5, window_bounds = array<i64: 48, 6>}, {pipeline_mode = #tpu.pipeline_mode<synchronous>, transform_indices = @transform_6, window_bounds = array<i64: 1, 6>}, {pipeline_mode = #tpu.pipeline_mode<synchronous>, transform_indices = @transform_7, window_bounds = array<i64: 6, 10>}, {pipeline_mode = #tpu.pipeline_mode<synchronous>, transform_indices = @transform_8, window_bounds = array<i64: 6, 10>}, {pipeline_mode = #tpu.pipeline_mode<synchronous>, transform_indices = @transform_9, window_bounds = array<i64: 8, 10>}, {pipeline_mode = #tpu.pipeline_mode<synchronous>, transform_indices = @transform_10, window_bounds = array<i64: 8, 10>}, {pipeline_mode = #tpu.pipeline_mode<synchronous>, transform_indices = @transform_11, window_bounds = array<i64: 10, 8>}, {pipeline_mode = #tpu.pipeline_mode<synchronous>, transform_indices = @transform_12, window_bounds = array<i64: 10, 8>}, {transform_indices = @transform_13, window_bounds = array<i64: 1, 8, 8>}, {transform_indices = @transform_14, window_bounds = array<i64: 1, 8, 8>}]} {
    %c0 = arith.constant 0 : index
    %c0_0 = arith.constant 0 : index
    %c0_1 = arith.constant 0 : index
    %0 = vector.load %arg1[%c0, %c0_0, %c0_1] : memref<1x32x16xf32, #tpu.memory_space<vmem>>, vector<1x32x16xf32>
    %1 = vector.shape_cast %0 : vector<1x32x16xf32> to vector<32x16xf32>
    %c0_2 = arith.constant 0 : index
    %c0_3 = arith.constant 0 : index
    %c0_4 = arith.constant 0 : index
    %2 = vector.load %arg2[%c0_2, %c0_3, %c0_4] : memref<3x16x32xf32, #tpu.memory_space<vmem>>, vector<1x16x32xf32>
    %3 = vector.shape_cast %2 : vector<1x16x32xf32> to vector<16x32xf32>
    %cst = arith.constant dense<0.000000e+00> : vector<16x16xf32>
    %4 = tpu.matmul %3, %1, %cst {dimension_numbers = #tpu.dot_dimension_numbers<[1], [0], [0], [1], [0, 0, 1, 1], [], []>} : vector<16x32xf32>, vector<32x16xf32>, vector<16x16xf32> -> vector<16x16xf32>
    %c1 = arith.constant 1 : index
    %c0_5 = arith.constant 0 : index
    %c0_6 = arith.constant 0 : index
    %5 = vector.load %arg2[%c1, %c0_5, %c0_6] : memref<3x16x32xf32, #tpu.memory_space<vmem>>, vector<1x16x32xf32>
    %6 = vector.shape_cast %5 : vector<1x16x32xf32> to vector<16x32xf32>
    %cst_7 = arith.constant dense<0.000000e+00> : vector<16x16xf32>
    %7 = tpu.matmul %6, %1, %cst_7 {dimension_numbers = #tpu.dot_dimension_numbers<[1], [0], [0], [1], [0, 0, 1, 1], [], []>} : vector<16x32xf32>, vector<32x16xf32>, vector<16x16xf32> -> vector<16x16xf32>
    %c2 = arith.constant 2 : index
    %c0_8 = arith.constant 0 : index
    %c0_9 = arith.constant 0 : index
    %8 = vector.load %arg2[%c2, %c0_8, %c0_9] : memref<3x16x32xf32, #tpu.memory_space<vmem>>, vector<1x16x32xf32>
    %9 = vector.shape_cast %8 : vector<1x16x32xf32> to vector<16x32xf32>
    %cst_10 = arith.constant dense<0.000000e+00> : vector<16x16xf32>
    %10 = tpu.matmul %9, %1, %cst_10 {dimension_numbers = #tpu.dot_dimension_numbers<[1], [0], [0], [1], [0, 0, 1, 1], [], []>} : vector<16x32xf32>, vector<32x16xf32>, vector<16x16xf32> -> vector<16x16xf32>
    %11 = tpu.concatenate %4, %7, %10 in 1 : vector<16x16xf32>, vector<16x16xf32>, vector<16x16xf32> -> vector<16x48xf32>
    %c0_11 = arith.constant 0 : index
    %c0_12 = arith.constant 0 : index
    %12 = vector.load %arg3[%c0_11, %c0_12] : memref<48x16xf32, #tpu.memory_space<vmem>>, vector<48x16xf32>
    %cst_13 = arith.constant dense<0.000000e+00> : vector<16x16xf32>
    %13 = tpu.matmul %11, %12, %cst_13 {dimension_numbers = #tpu.dot_dimension_numbers<[1], [0], [0], [1], [0, 0, 1, 1], [], []>} : vector<16x48xf32>, vector<48x16xf32>, vector<16x16xf32> -> vector<16x16xf32>
    %c0_14 = arith.constant 0 : index
    %c0_15 = arith.constant 0 : index
    %14 = vector.load %arg4[%c0_14, %c0_15] : memref<1x16xf32, #tpu.memory_space<vmem>>, vector<1x16xf32>
    %15 = vector.shape_cast %14 : vector<1x16xf32> to vector<16xf32>
    %16 = vector.shape_cast %15 : vector<16xf32> to vector<1x16xf32>
    %17 = vector.broadcast %16 : vector<1x16xf32> to vector<16x16xf32>
    %18 = arith.addf %13, %17 : vector<16x16xf32>
    %cst_16 = arith.constant 0.000000e+00 : f32
    %19 = vector.broadcast %cst_16 : f32 to vector<16x16xf32>
    %20 = arith.cmpf ogt, %18, %19 : vector<16x16xf32>
    %cst_17 = arith.constant 2.000000e-01 : f32
    %21 = vector.broadcast %cst_17 : f32 to vector<16x16xf32>
    %22 = arith.mulf %21, %18 : vector<16x16xf32>
    %23 = arith.select %20, %18, %22 : vector<16x16xi1>, vector<16x16xf32>
    %c0_18 = arith.constant 0 : index
    %c0_19 = arith.constant 0 : index
    %c0_20 = arith.constant 0 : index
    %24 = vector.load %arg5[%c0_18, %c0_19, %c0_20] : memref<3x8x16xf32, #tpu.memory_space<vmem>>, vector<1x8x16xf32>
    %25 = vector.shape_cast %24 : vector<1x8x16xf32> to vector<8x16xf32>
    %cst_21 = arith.constant dense<0.000000e+00> : vector<8x16xf32>
    %26 = tpu.matmul %25, %23, %cst_21 {dimension_numbers = #tpu.dot_dimension_numbers<[1], [0], [0], [1], [0, 0, 1, 1], [], []>} : vector<8x16xf32>, vector<16x16xf32>, vector<8x16xf32> -> vector<8x16xf32>
    %c1_22 = arith.constant 1 : index
    %c0_23 = arith.constant 0 : index
    %c0_24 = arith.constant 0 : index
    %27 = vector.load %arg5[%c1_22, %c0_23, %c0_24] : memref<3x8x16xf32, #tpu.memory_space<vmem>>, vector<1x8x16xf32>
    %28 = vector.shape_cast %27 : vector<1x8x16xf32> to vector<8x16xf32>
    %cst_25 = arith.constant dense<0.000000e+00> : vector<8x16xf32>
    %29 = tpu.matmul %28, %23, %cst_25 {dimension_numbers = #tpu.dot_dimension_numbers<[1], [0], [0], [1], [0, 0, 1, 1], [], []>} : vector<8x16xf32>, vector<16x16xf32>, vector<8x16xf32> -> vector<8x16xf32>
    %c2_26 = arith.constant 2 : index
    %c0_27 = arith.constant 0 : index
    %c0_28 = arith.constant 0 : index
    %30 = vector.load %arg5[%c2_26, %c0_27, %c0_28] : memref<3x8x16xf32, #tpu.memory_space<vmem>>, vector<1x8x16xf32>
    %31 = vector.shape_cast %30 : vector<1x8x16xf32> to vector<8x16xf32>
    %cst_29 = arith.constant dense<0.000000e+00> : vector<8x16xf32>
    %32 = tpu.matmul %31, %23, %cst_29 {dimension_numbers = #tpu.dot_dimension_numbers<[1], [0], [0], [1], [0, 0, 1, 1], [], []>} : vector<8x16xf32>, vector<16x16xf32>, vector<8x16xf32> -> vector<8x16xf32>
    %33 = tpu.concatenate %26, %29, %32 in 1 : vector<8x16xf32>, vector<8x16xf32>, vector<8x16xf32> -> vector<8x48xf32>
    %c0_30 = arith.constant 0 : index
    %c0_31 = arith.constant 0 : index
    %34 = vector.load %arg6[%c0_30, %c0_31] : memref<48x6xf32, #tpu.memory_space<vmem>>, vector<48x6xf32>
    %cst_32 = arith.constant dense<0.000000e+00> : vector<8x6xf32>
    %35 = tpu.matmul %33, %34, %cst_32 {dimension_numbers = #tpu.dot_dimension_numbers<[1], [0], [0], [1], [0, 0, 1, 1], [], []>} : vector<8x48xf32>, vector<48x6xf32>, vector<8x6xf32> -> vector<8x6xf32>
    %c0_33 = arith.constant 0 : index
    %c0_34 = arith.constant 0 : index
    %36 = vector.load %arg7[%c0_33, %c0_34] : memref<1x6xf32, #tpu.memory_space<vmem>>, vector<1x6xf32>
    %37 = vector.shape_cast %36 : vector<1x6xf32> to vector<6xf32>
    %38 = vector.shape_cast %37 : vector<6xf32> to vector<1x6xf32>
    %39 = vector.broadcast %38 : vector<1x6xf32> to vector<8x6xf32>
    %40 = arith.addf %35, %39 : vector<8x6xf32>
    %cst_35 = arith.constant 5.000000e+00 : f32
    %41 = vector.broadcast %cst_35 : f32 to vector<8x6xf32>
    %42 = arith.subf %40, %41 : vector<8x6xf32>
    %cst_36 = arith.constant 0.000000e+00 : f32
    %43 = vector.broadcast %cst_36 : f32 to vector<8x6xf32>
    %44 = arith.subf %43, %42 : vector<8x6xf32>
    %45 = math.exp %44 : vector<8x6xf32>
    %cst_37 = arith.constant 1.000000e+00 : f32
    %46 = vector.broadcast %cst_37 : f32 to vector<8x6xf32>
    %47 = arith.addf %46, %45 : vector<8x6xf32>
    %cst_38 = arith.constant 1.000000e+00 : f32
    %48 = vector.broadcast %cst_38 : f32 to vector<8x6xf32>
    %49 = arith.divf %48, %47 : vector<8x6xf32>
    %50 = math.log %49 : vector<8x6xf32>
    %cst_39 = arith.constant 2.300000e+00 : f32
    %51 = vector.broadcast %cst_39 : f32 to vector<8x6xf32>
    %52 = arith.mulf %51, %50 : vector<8x6xf32>
    %53 = math.exp %52 : vector<8x6xf32>
    %cst_40 = arith.constant 2.000000e+00 : f32
    %54 = vector.broadcast %cst_40 : f32 to vector<8x6xf32>
    %55 = arith.mulf %54, %53 : vector<8x6xf32>
    %cst_41 = arith.constant 1.000000e-07 : f32
    %56 = vector.broadcast %cst_41 : f32 to vector<8x6xf32>
    %57 = arith.addf %55, %56 : vector<8x6xf32>
    %c0_42 = arith.constant 0 : index
    %c0_43 = arith.constant 0 : index
    %58 = vector.load %arg8[%c0_42, %c0_43] : memref<6x10xf32, #tpu.memory_space<vmem>>, vector<6x10xf32>
    %cst_44 = arith.constant dense<0.000000e+00> : vector<8x10xf32>
    %59 = tpu.matmul %57, %58, %cst_44 {dimension_numbers = #tpu.dot_dimension_numbers<[1], [0], [0], [1], [0, 0, 1, 1], [], []>} : vector<8x6xf32>, vector<6x10xf32>, vector<8x10xf32> -> vector<8x10xf32>
    %c0_45 = arith.constant 0 : index
    %c0_46 = arith.constant 0 : index
    %60 = vector.load %arg9[%c0_45, %c0_46] : memref<6x10xf32, #tpu.memory_space<vmem>>, vector<6x10xf32>
    %cst_47 = arith.constant dense<0.000000e+00> : vector<8x10xf32>
    %61 = tpu.matmul %57, %60, %cst_47 {dimension_numbers = #tpu.dot_dimension_numbers<[1], [0], [0], [1], [0, 0, 1, 1], [], []>} : vector<8x6xf32>, vector<6x10xf32>, vector<8x10xf32> -> vector<8x10xf32>
    %c0_48 = arith.constant 0 : index
    %c0_49 = arith.constant 0 : index
    %c0_50 = arith.constant 0 : index
    %62 = vector.load %arg14[%c0_48, %c0_49, %c0_50] : memref<1x8x8xf32, #tpu.memory_space<vmem>>, vector<1x8x8xf32>
    %63 = vector.shape_cast %62 : vector<1x8x8xf32> to vector<8x8xf32>
    %cst_51 = arith.constant 2.000000e+00 : f32
    %64 = vector.broadcast %cst_51 : f32 to vector<8x8xf32>
    %65 = arith.mulf %64, %63 : vector<8x8xf32>
    %cst_52 = arith.constant 1.000000e+00 : f32
    %66 = vector.broadcast %cst_52 : f32 to vector<8x8xf32>
    %67 = arith.subf %65, %66 : vector<8x8xf32>
    %c0_53 = arith.constant 0 : index
    %c0_54 = arith.constant 0 : index
    %68 = vector.load %arg10[%c0_53, %c0_54] : memref<8x10xf32, #tpu.memory_space<vmem>>, vector<8x10xf32>
    %cst_55 = arith.constant dense<0.000000e+00> : vector<8x10xf32>
    %69 = tpu.matmul %67, %68, %cst_55 {dimension_numbers = #tpu.dot_dimension_numbers<[1], [0], [0], [1], [0, 0, 1, 1], [], []>} : vector<8x8xf32>, vector<8x10xf32>, vector<8x10xf32> -> vector<8x10xf32>
    %c0_56 = arith.constant 0 : index
    %c0_57 = arith.constant 0 : index
    %70 = vector.load %arg11[%c0_56, %c0_57] : memref<8x10xf32, #tpu.memory_space<vmem>>, vector<8x10xf32>
    %cst_58 = arith.constant dense<0.000000e+00> : vector<8x10xf32>
    %71 = tpu.matmul %67, %70, %cst_58 {dimension_numbers = #tpu.dot_dimension_numbers<[1], [0], [0], [1], [0, 0, 1, 1], [], []>} : vector<8x8xf32>, vector<8x10xf32>, vector<8x10xf32> -> vector<8x10xf32>
    %72 = arith.mulf %69, %59 : vector<8x10xf32>
    %73 = arith.mulf %71, %61 : vector<8x10xf32>
    %74 = arith.subf %72, %73 : vector<8x10xf32>
    %75 = arith.mulf %69, %61 : vector<8x10xf32>
    %76 = arith.mulf %71, %59 : vector<8x10xf32>
    %77 = arith.addf %75, %76 : vector<8x10xf32>
    %c0_59 = arith.constant 0 : index
    %c0_60 = arith.constant 0 : index
    %78 = vector.load %arg12[%c0_59, %c0_60] : memref<10x8xf32, #tpu.memory_space<vmem>>, vector<10x8xf32>
    %cst_61 = arith.constant dense<0.000000e+00> : vector<8x8xf32>
    %79 = tpu.matmul %74, %78, %cst_61 {dimension_numbers = #tpu.dot_dimension_numbers<[1], [0], [0], [1], [0, 0, 1, 1], [], []>} : vector<8x10xf32>, vector<10x8xf32>, vector<8x8xf32> -> vector<8x8xf32>
    %c0_62 = arith.constant 0 : index
    %c0_63 = arith.constant 0 : index
    %80 = vector.load %arg13[%c0_62, %c0_63] : memref<10x8xf32, #tpu.memory_space<vmem>>, vector<10x8xf32>
    %cst_64 = arith.constant dense<0.000000e+00> : vector<8x8xf32>
    %81 = tpu.matmul %77, %80, %cst_64 {dimension_numbers = #tpu.dot_dimension_numbers<[1], [0], [0], [1], [0, 0, 1, 1], [], []>} : vector<8x10xf32>, vector<10x8xf32>, vector<8x8xf32> -> vector<8x8xf32>
    %82 = arith.addf %79, %81 : vector<8x8xf32>
    %c0_65 = arith.constant 0 : index
    %c0_66 = arith.constant 0 : index
    %c0_67 = arith.constant 0 : index
    %83 = vector.load %arg15[%c0_65, %c0_66, %c0_67] : memref<1x8x8xf32, #tpu.memory_space<vmem>>, vector<1x8x8xf32>
    %84 = vector.shape_cast %83 : vector<1x8x8xf32> to vector<8x8xf32>
    %85 = vector.shape_cast %82 : vector<8x8xf32> to vector<1x8x8xf32>
    tpu.vector_store %arg15[%c0_65, %c0_66, %c0_67], %85 {strides = array<i32>} : memref<1x8x8xf32, #tpu.memory_space<vmem>>, vector<1x8x8xf32>,
    return
  }
  func.func @transform_0(%arg0: i32) -> (i32, i32, i32) {
    %c0_i32 = arith.constant 0 : i32
    %c0_i32_0 = arith.constant 0 : i32
    %c0_i32_1 = arith.constant 0 : i32
    return %arg0, %c0_i32, %c0_i32_0 : i32, i32, i32
  }
  func.func @transform_1(%arg0: i32) -> (i32, i32, i32) {
    %c0_i32 = arith.constant 0 : i32
    %c0_i32_0 = arith.constant 0 : i32
    %c0_i32_1 = arith.constant 0 : i32
    %c0_i32_2 = arith.constant 0 : i32
    return %c0_i32, %c0_i32_0, %c0_i32_1 : i32, i32, i32
  }
  func.func @transform_2(%arg0: i32) -> (i32, i32) {
    %c0_i32 = arith.constant 0 : i32
    %c0_i32_0 = arith.constant 0 : i32
    %c0_i32_1 = arith.constant 0 : i32
    return %c0_i32, %c0_i32_0 : i32, i32
  }
  func.func @transform_3(%arg0: i32) -> (i32, i32) {
    %c0_i32 = arith.constant 0 : i32
    %c0_i32_0 = arith.constant 0 : i32
    %c0_i32_1 = arith.constant 0 : i32
    return %c0_i32, %c0_i32_0 : i32, i32
  }
  func.func @transform_4(%arg0: i32) -> (i32, i32, i32) {
    %c0_i32 = arith.constant 0 : i32
    %c0_i32_0 = arith.constant 0 : i32
    %c0_i32_1 = arith.constant 0 : i32
    %c0_i32_2 = arith.constant 0 : i32
    return %c0_i32, %c0_i32_0, %c0_i32_1 : i32, i32, i32
  }
  func.func @transform_5(%arg0: i32) -> (i32, i32) {
    %c0_i32 = arith.constant 0 : i32
    %c0_i32_0 = arith.constant 0 : i32
    %c0_i32_1 = arith.constant 0 : i32
    return %c0_i32, %c0_i32_0 : i32, i32
  }
  func.func @transform_6(%arg0: i32) -> (i32, i32) {
    %c0_i32 = arith.constant 0 : i32
    %c0_i32_0 = arith.constant 0 : i32
    %c0_i32_1 = arith.constant 0 : i32
    return %c0_i32, %c0_i32_0 : i32, i32
  }
  func.func @transform_7(%arg0: i32) -> (i32, i32) {
    %c0_i32 = arith.constant 0 : i32
    %c0_i32_0 = arith.constant 0 : i32
    %c0_i32_1 = arith.constant 0 : i32
    return %c0_i32, %c0_i32_0 : i32, i32
  }
  func.func @transform_8(%arg0: i32) -> (i32, i32) {
    %c0_i32 = arith.constant 0 : i32
    %c0_i32_0 = arith.constant 0 : i32
    %c0_i32_1 = arith.constant 0 : i32
    return %c0_i32, %c0_i32_0 : i32, i32
  }
  func.func @transform_9(%arg0: i32) -> (i32, i32) {
    %c0_i32 = arith.constant 0 : i32
    %c0_i32_0 = arith.constant 0 : i32
    %c0_i32_1 = arith.constant 0 : i32
    return %c0_i32, %c0_i32_0 : i32, i32
  }
  func.func @transform_10(%arg0: i32) -> (i32, i32) {
    %c0_i32 = arith.constant 0 : i32
    %c0_i32_0 = arith.constant 0 : i32
    %c0_i32_1 = arith.constant 0 : i32
    return %c0_i32, %c0_i32_0 : i32, i32
  }
  func.func @transform_11(%arg0: i32) -> (i32, i32) {
    %c0_i32 = arith.constant 0 : i32
    %c0_i32_0 = arith.constant 0 : i32
    %c0_i32_1 = arith.constant 0 : i32
    return %c0_i32, %c0_i32_0 : i32, i32
  }
  func.func @transform_12(%arg0: i32) -> (i32, i32) {
    %c0_i32 = arith.constant 0 : i32
    %c0_i32_0 = arith.constant 0 : i32
    %c0_i32_1 = arith.constant 0 : i32
    return %c0_i32, %c0_i32_0 : i32, i32
  }
  func.func @transform_13(%arg0: i32) -> (i32, i32, i32) {
    %c0_i32 = arith.constant 0 : i32
    %c0_i32_0 = arith.constant 0 : i32
    %c0_i32_1 = arith.constant 0 : i32
    return %arg0, %c0_i32, %c0_i32_0 : i32, i32, i32
  }
  func.func @transform_14(%arg0: i32) -> (i32, i32, i32) {
    %c0_i32 = arith.constant 0 : i32
    %c0_i32_0 = arith.constant 0 : i32
    %c0_i32_1 = arith.constant 0 : i32
    return %arg0, %c0_i32, %c0_i32_0 : i32, i32, i32
  }
}

</mosaic_0001>

<bundles_post_ra>
// kernel: tpu_custom_call.1
= control target key start
LH: loop header
LB: loop body
LE: loop exit
PB: predicated region body
PF: predicated region fallthrough
CT: control target
= control target key end

     0   :  { %s2498_s0 = inlined_call_operand.vmem [shape: f32[2,32,16], index: 0, kind: input, shape index: {}]   ;;  %s2499_s1 = inlined_call_operand.vmem [shape: f32[3,16,32], index: 1, kind: input, shape index: {}]   ;;  %s2500_s2 = inlined_call_operand.vmem [shape: f32[48,16], index: 2, kind: input, shape index: {}]   ;;  %s2501_s3 = inlined_call_operand.vmem [shape: f32[1,16], index: 3, kind: input, shape index: {}]   ;;  %s2502_s4 = inlined_call_operand.vmem [shape: f32[3,8,16], index: 4, kind: input, shape index: {}]   ;;  %s2503_s5 = inlined_call_operand.vmem [shape: f32[48,6], index: 5, kind: input, shape index: {}]   ;;  %s2504_s6 = inlined_call_operand.vmem [shape: f32[1,6], index: 6, kind: input, shape index: {}]   ;;  %s2505_s7 = inlined_call_operand.vmem [shape: f32[6,10], index: 7, kind: input, shape index: {}]   ;;  %s2506_s8 = inlined_call_operand.vmem [shape: f32[6,10], index: 8, kind: input, shape index: {}]   ;;  %s2507_s9 = inlined_call_operand.vmem [shape: f32[8,10], index: 9, kind: input, shape index: {}]   ;;  %s2508_s10 = inlined_call_operand.vmem [shape: f32[8,10], index: 10, kind: input, shape index: {}]   ;;  %s2509_s11 = inlined_call_operand.vmem [shape: f32[10,8], index: 11, kind: input, shape index: {}]   ;;  %s2510_s12 = inlined_call_operand.vmem [shape: f32[10,8], index: 12, kind: input, shape index: {}]   ;;  %s2511_s13 = inlined_call_operand.vmem [shape: f32[2,8,8], index: 13, kind: input, shape index: {}]   ;;  %s2512_s14 = inlined_call_operand.hbm [shape: f32[2,8,8], index: 14, kind: output, shape index: {}]  }
   0x1   :  { %2516 = sst [smem:[#allocation7_spill]] %s2498_s0 }
   0x2   :  { %19 = vsyncpa [#allocation3], 0 }
   0x3   :  { %21 = vsyncpa [#allocation3 + $0x1], 0  ;;  %s2229_s29 = smov 0   ;;  %s2231_s30 = smov 0  }
   0x4   :  { %s2233_s15 = smov 0   ;;  %s2235_s16 = smov 0  }
   0x5 LB: > { %2517 = sst [smem:[#allocation5_spill]] %s2141_s15  ;;  %s2250_s17 = sadd.s32 4294967295, %s2145_s16   ;;  %s2145_s16 = sphi %s2235_s16, %s2530_s16   ;;  %s2141_s15 = sphi %s2233_s15, %s2527_s15   ;;  %s2137_s30 = sphi %s2231_s30, %s2529_s30   ;;  %s2133_s29 = sphi %s2229_s29, %s2528_s29  }
   0x6   : > { %s1747_s18 = sadd.s32 4294967294, %s2145_s16   ;;  %s2254_s19 = sadd.s32 1, %s2145_s16  }
   0x7   : > { %s338_s20 = sadd.s32 1, %s2141_s15  ;;  %s335_s21 = ssub.s32 %s2145_s16, %s2254_s19 }
   0x8   : > { %p348_p0 = scmp.ne.s32.totalorder %s2141_s15, %s2137_s30  ;;  %p336_p1 = scmp.eq.s32.totalorder %s335_s21, 0 }
   0x9   : > { %p349_p2 = scmp.eq.s32.totalorder %s2250_s17, 1  ;;  %p354_p3 = scmp.ne.s32.totalorder %s2137_s30, %s2133_s29 }
   0xa   : > { %p355_p4 = scmp.eq.s32.totalorder %s1747_s18, 1  ;;  %p1750_p7 = scmp.ge.s32.totalorder %s2145_s16, 1 }
   0xb   : > { %s2265_s22 = scalar_select %p336_p1, %s2141_s15, %s338_s20  }
   0xc   : > { %p2267_p5 = por %p349_p2, %p348_p0  ;;  %p2271_p6 = por %p355_p4, %p354_p3 }
   0xd   : > { %2518 = sst [smem:[#allocation6_spill]] %s2265_s22  ;;  %p424_p8 = scmp.lt.s32.totalorder %s2145_s16, 3 }
   0xf   : > { %p425_p9 = pnand %p1750_p7, %p424_p8 }
  0x10   : > { %p474_p10 = scmp.lt.s32.totalorder (!%p425_p9), %s2250_s17, 1  ;;  %v487_v0 = vld [vmem:[%s2499_s1] sm:$0xff] (!%p425_p9)  ;;  %vm489_vm0 = vcmask (!%p425_p9), 261120   ;;  %v1757_v1 = vld [vmem:[%s2499_s1 + $0x10] sm:$0xff] (!%p425_p9)  ;;  %s2521_s0 = sld [smem:[#allocation7_spill]] (!%p425_p9)  ;;  %v488_v8 = vld [vmem:[%s2499_s1 + $0x8] sm:$0xff] (!%p425_p9) }
  0x11   : > { %428 = sbr.rel (%p425_p9) target bundleno = 1670 (0x686), region = 76  ;;  %1856 = vmatprep.mubr.msk.f32.mxu0 (!%p425_p9), %vm489_vm0, %v487_v0  ;;  %1867 = vmatprep.mubr.msk.f32.mxu1 (!%p425_p9), %vm489_vm0, %v1757_v1  ;;  %v1758_v9 = vld [vmem:[%s2499_s1 + $0x18] sm:$0xff] (!%p425_p9)  ;;  %v1761_v10 = vld [vmem:[%s2499_s1 + $0x20] sm:$0xff] (!%p425_p9)  ;;  %v1762_v11 = vld [vmem:[%s2499_s1 + $0x28] sm:$0xff] (!%p425_p9)  ;;  %s2515_s27 = smov (!%p425_p9), 32   ;;  %vm755_vm1 = vcmask (!%p425_p9), 130048  }
  0x12   : > { %v760_v12 = vld [vmem:[%s2500_s2] sm:$0xff] (!%p425_p9)  ;;  %v761_v13 = vld [vmem:[%s2500_s2 + $0x8] sm:$0xff] (!%p425_p9)  ;;  %v762_v15 = vld [vmem:[%s2500_s2 + $0x10] sm:$0xff] (!%p425_p9)  ;;  %vm773_vm2 = vcmask (!%p425_p9), 392192   ;;  %v2149_v35 = vmov (!%p425_p9), 0.0|0.0   ;;  %vm2150_vm3 = vmmov (!%p425_p9), 0  }
  0x13   : > { %v1990_v14 = vpack.c.bf16 (!%p425_p9), %v761_v13, %v760_v12  ;;  %v763_v16 = vld [vmem:[%s2500_s2 + $0x18] sm:$0xff] (!%p425_p9)  ;;  %v764_v18 = vld [vmem:[%s2500_s2 + $0x20] sm:$0xff] (!%p425_p9)  ;;  %v765_v19 = vld [vmem:[%s2500_s2 + $0x28] sm:$0xff] (!%p425_p9)  ;;  %v2151_v36 = vmov (!%p425_p9), 0.0   ;;  %vm1200_vm6 = vcmask (!%p425_p9), 1045504   ;;  %vm1352_vm7 = vcmask (!%p425_p9), 64512  }
  0x14   : > { %v1994_v17 = vpack.c.bf16 (!%p425_p9), %v763_v16, %v762_v15  ;;  %v1998_v20 = vpack.c.bf16 (!%p425_p9), %v765_v19, %v764_v18  ;;  %v1765_v37 = vld [vmem:[%s2501_s3] ss:$0 sm:$0xff] (!%p425_p9)  ;;  %v1771_v48 = vld [vmem:[%s2502_s4 + $0x10] sm:$0xff] (!%p425_p9)  ;;  %v1769_v49 = vld [vmem:[%s2502_s4 + $0x8] sm:$0xff] (!%p425_p9)  ;;  %vm1196_vm8 = vcmask (!%p425_p9), 48128   ;;  %vm1511_vm9 = vcmask (!%p425_p9), 1041408  }
  0x15   : > { %v861_v47 = vld [vmem:[%s2502_s4] sm:$0xff] (!%p425_p9)  ;;  %v1096_v51 = vld [vmem:[%s2503_s5 + $0x8] sm:$0xff] (!%p425_p9)  ;;  %v1097_v52 = vld [vmem:[%s2503_s5 + $0x10] sm:$0xff] (!%p425_p9)  ;;  %vm2152_vm10 = vmmov (!%p425_p9), 1   ;;  %vm1507_vm12 = vcmask (!%p425_p9), 80896   ;;  %s471_s22 = sand.u32 (!%p425_p9), 1, %s2137_s30  }
  0x16   : > { %v1095_v50 = vld [vmem:[%s2503_s5] sm:$0xff] (!%p425_p9)  ;;  %v1098_v54 = vld [vmem:[%s2503_s5 + $0x18] sm:$0xff] (!%p425_p9)  ;;  %v1100_v57 = vld [vmem:[%s2503_s5 + $0x28] sm:$0xff] (!%p425_p9)  ;;  %s1751_s28 = sshll.u32 (!%p425_p9), %s471_s22, 3 }
  0x17   : > { %v2012_v53 = vpack.c.bf16 (!%p425_p9), %v1096_v51, %v1095_v50  ;;  %v2015_v55 = vpack.c.bf16 (!%p425_p9), %v1098_v54, %v1097_v52  ;;  %v1099_v56 = vld [vmem:[%s2503_s5 + $0x20] sm:$0xff] (!%p425_p9)  ;;  %vm2433_vm11 = vmpackc.low (!%p425_p9), %vm1511_vm9, %vm2152_vm10 }
  0x18   : > { %s2287_s18 = scalar_select %p474_p10, %s2250_s17, 1  ;;  %v2018_v58 = vpack.c.bf16 %v1100_v57, %v1099_v56 }
  0x1a   : > { %s1791_s20 = sshll.u32 %s2287_s18, 5 }
  0x1b   : > { %s478_s15 = scalar_lea.vmem %s2521_s0, %s1791_s20  ;;  %s2514_s0 = smov 16  }
  0x1c   : > { %v483_v2 = vld [vmem:[%s478_s15] sm:$0xff]  ;;  %v484_v3 = vld [vmem:[%s478_s15 + $0x8] sm:$0xff]  ;;  %v485_v4 = vld [vmem:[%s478_s15 + $0x10] sm:$0xff]  ;;  %s473_s20 = scalar_lea.vmem [#allocation2], %s1751_s28 }
  0x1d   : > { %v1966_v5 = vpack.c.bf16 %v484_v3, %v483_v2  ;;  %v486_v6 = vld [vmem:[%s478_s15 + $0x18] sm:$0xff]  ;;  %s1754_s15 = sshll.u32 %s2287_s18, 3  ;;  %s1676_s21 = sshll.u32 %s473_s20, 4  ;;  %s2457_s21 = int_to_ptr.vmem [resolvable:$true] %s1676_s21 }
  0x1e   : > { %v1970_v7 = vpack.c.bf16 %v486_v6, %v485_v4  ;;  %v1426_v6 = vld [vmem:[%s2508_s10] sm:$0xff]  ;;  %s1663_s18 = scalar_lea.sflag [#allocation3], %s471_s22  ;;  %s2083_s26 = scalar_lea.vmem %s2457_s21, 128 }
  0x1f   : > { %1967 = vmatprep.subr.bf16.mxu0 %v1966_v5  ;;  %1975 = vmatprep.subr.bf16.mxu1 %v1966_v5  ;;  %p2084_p11 = scmp.ne.s32.totalorder %s2457_s21, %s2083_s26 }
  0x20   : > { %1969 = vmatpush3.bf16.msra.mxu0 %v1966_v5  ;;  %1977 = vmatpush3.bf16.msra.mxu1 %v1966_v5 }
  0x21   : > { %1971 = vmatprep.subr.bf16.mxu0 %v1970_v7  ;;  %1979 = vmatprep.subr.bf16.mxu1 %v1970_v7  ;;  %p2085_p12 = pnand %p2084_p11, %p2267_p5 }
  0x23   : > { %p2086_p13 = pneg %p2085_p12 }
  0x24   : > { %1973 = vmatpush3.bf16.msra.mxu0 %v1970_v7  ;;  %1981 = vmatpush3.bf16.msra.mxu1 %v1970_v7 }
  0x25   : > { %1983 = vmatprep.subr.bf16.mxu0 %v1966_v5  ;;  %1991 = vmatprep.subr.bf16.mxu1 %v1990_v14 }
  0x27   : > { %1857 = vmatmul.mubr.msk.f32.vlgmr.msra.gmra.mrb[0].mxu0 %vm489_vm0, %v488_v8  ;;  %1868 = vmatmul.mubr.msk.f32.vlgmr.msra.gmra.mrb[0].mxu1 %vm489_vm0, %v1758_v9 }
  0x28   : > { %1985 = vmatpush3.bf16.msra.mxu0 %v1966_v5  ;;  %1878 = vmatprep.mubr.msk.f32.mxu0 %vm489_vm0, %v1761_v10  ;;  %v1195_v5 = vld [vmem:[%s2505_s7] sm:$0x3f] }
  0x29   : > { %1987 = vmatprep.subr.bf16.mxu0 %v1970_v7  ;;  %1993 = vmatpush3.bf16.msra.mxu1 %v1990_v14  ;;  %v1773_v10 = vld [vmem:[%s2504_s6] ss:$0 sm:$0xff] }
  0x2a   : > { %1995 = vmatprep.subr.bf16.mxu1 %v1994_v17 }
  0x2c   : > { %1989 = vmatpush3.bf16.msra.mxu0 %v1970_v7 }
  0x2d   : > { %1997 = vmatpush3.bf16.msra.mxu1 %v1994_v17  ;;  %2002 = vmatprep.subr.bf16.mxu0 %v2149_v35 }
  0x2e   : > { %1999 = vmatprep.subr.bf16.mxu1 %v1998_v20 }
  0x2f   : > { %1879 = vmatmul.mubr.msk.f32.vlgmr.msra.gmra.mrb[2].mxu0 %vm489_vm0, %v1762_v11 }
  0x30   : > { %1900 = vmatprep.mubr.msk.f32.mxu0 %vm2150_vm3, %v2151_v36 }
  0x31   : > { %2001 = vmatpush3.bf16.msra.mxu1 %v1998_v20 }
  0x32   : > { %2008 = vmatprep.subr.bf16.mxu1 %v2149_v35 }
  0xfa   : > { %v1858_v21 = vpop.f32.mrb[0].mxu0  ;;  %v1869_v22 = vpop.f32.mrb[0].mxu1 }
  0xfb   : > { %v562_v23 = vpop.f32.mrb[1].mxu0  ;;  %v646_v24 = vpop.f32.mrb[1].mxu1 }
  0xfc   : > { %741 = vrot.lane.b32.xlu0 %v646_v24, %s2514_s0 }
 0x100   : > { %743 = vrot.lane.b32.xlu0 %v1869_v22, %s2514_s0  ;;  %s2522_s0 = smov 32  }
 0x102   : > { %v1880_v25 = vpop.f32.mrb[2].mxu0 }
 0x103   : > { %v730_v26 = vpop.f32.mrb[3].mxu0 }
 0x104   : > { %749 = vrot.lane.b32.xlu1 %v730_v26, %s2515_s27 }
 0x108   : > { %751 = vrot.lane.b32.xlu1 %v1880_v25, %s2515_s27  ;;  %s2523_s27 = smov 16  }
 0x16e   : > { %v742_v27 = vpop.permute.xlu0 %741 }
 0x16f   : > { %v756_v28 = vsel %vm755_vm1, %v562_v23, %v742_v27  ;;  %v1274_v27 = vld [vmem:[%s2506_s8] sm:$0x3f] }
 0x172   : > { %v744_v30 = vpop.permute.xlu0 %743 }
 0x173   : > { %v757_v32 = vsel %vm755_vm1, %v1858_v21, %v744_v30 }
 0x176   : > { %v750_v29 = vpop.permute.xlu1 %749 }
 0x177   : > { %v758_v31 = vsel %vm489_vm0, %v756_v28, %v750_v29  ;;  %v1351_v28 = vld [vmem:[%s2507_s9] sm:$0xff] }
 0x178   : > { %1893 = vmatprep.mubr.msk.f32.mxu1 %vm773_vm2, %v758_v31  ;;  %v1505_v31 = vld [vmem:[%s2510_s12] sm:$0xff] }
 0x17a   : > { %v752_v33 = vpop.permute.xlu1 %751 }
 0x17b   : > { %v759_v34 = vsel %vm489_vm0, %v757_v32, %v752_v33  ;;  %v1506_v32 = vld [vmem:[%s2510_s12 + $0x8] sm:$0x3] }
 0x17c   : > { %1894 = vmatmul.mubr.msk.f32.vlgmr.msra.gmra.mrb[2].mxu1 %vm773_vm2, %v759_v34  ;;  %v2021_v33 = vpack.c.bf16 %v1506_v32, %v1505_v31 }
 0x17d   : > { %1914 = vmatprep.mubr.msk.f32.mxu1 %vm2150_vm3, %v2151_v36 }
 0x24f   : > { %v1895_v38 = vpop.f32.mrb[2].mxu1 }
 0x250   : > { %v852_v39 = vadd.f32 %v1895_v38, %v1765_v37  ;;  %v846_v40 = vpop.f32.mrb[3].mxu1 }
 0x251   : > { %v847_v41 = vadd.f32 %v1765_v37, %v846_v40 }
 0x252   : > { %vm856_vm4 = vcmp.gt.f32.partialorder %v852_v39, 0.0  ;;  %v858_v42 = vmul.f32 0.2, %v852_v39 }
 0x253   : > { %vm855_vm5 = vcmp.gt.f32.partialorder %v847_v41, 0.0  ;;  %v857_v43 = vmul.f32 0.2, %v847_v41 }
 0x254   : > { %v860_v44 = vsel %vm856_vm4, %v852_v39, %v858_v42 }
 0x255   : > { %v859_v45 = vsel %vm855_vm5, %v847_v41, %v857_v43  ;;  %v1503_v43 = vld [vmem:[%s2509_s11] sm:$0xff] }
 0x256   : > { %v2003_v46 = vpack.c.bf16 %v860_v44, %v859_v45  ;;  %v1504_v44 = vld [vmem:[%s2509_s11 + $0x8] sm:$0x3] }
 0x258   : > { %2004 = vmatpush3.bf16.msra.mxu0 %v2003_v46  ;;  %2010 = vmatpush3.bf16.msra.mxu1 %v2003_v46 }
 0x259   : > { %2005 = vmatprep.subr.bf16.mxu0 %v2149_v35  ;;  %1932 = vmatprep.subr.mxu1 %v2151_v36 }
 0x25b   : > { %1901 = vmatmul.mubr.msk.f32.vlgmr.msra.gmra.mrb[4].mxu0 %vm755_vm1, %v861_v47  ;;  %1915 = vmatmul.mubr.msk.f32.vlgmr.msra.gmra.mrb[4].mxu1 %vm755_vm1, %v1771_v48  ;;  %v2025_v48 = vpack.c.bf16 %v1504_v44, %v1503_v43 }
 0x25c   : > { %2007 = vmatpush3.bf16.msra.mxu0 %v2003_v46  ;;  %1907 = vmatprep.mubr.msk.f32.mxu0 %vm2150_vm3, %v2151_v36 }
 0x25d   : > { %2011 = vmatprep.subr.bf16.mxu0 %v2149_v35  ;;  %1934 = vmatprep.mubr.msk.f32.mxu1 %vm2150_vm3, %v2151_v36 }
 0x25e   : > { %1933 = vmatpush3.msk.msra.mxu1 %vm1200_vm6, %v1195_v5 }
 0x25f   : > { %1908 = vmatmul.mubr.msk.f32.vlgmr.msra.gmra.mrb[6].mxu0 %vm755_vm1, %v1769_v49  ;;  %1937 = vmatprep.subr.mxu1 %v2151_v36 }
 0x260   : > { %1929 = vmatprep.mubr.msk.f32.mxu0 %vm2150_vm3, %v2151_v36  ;;  %2013 = vmatpush3.bf16.msra.mxu0 %v2012_v53 }
 0x261   : > { %2014 = vmatprep.subr.bf16.mxu0 %v2149_v35 }
 0x264   : > { %2016 = vmatpush3.bf16.msra.mxu0 %v2015_v55 }
 0x265   : > { %2017 = vmatprep.subr.bf16.mxu0 %v2149_v35 }
 0x268   : > { %2019 = vmatpush3.bf16.msra.mxu0 %v2018_v58 }
 0x269   : > { %1947 = vmatprep.subr.mxu0 %v2151_v36 }
 0x32e   : > { %v931_v59 = vpop.f32.mrb[4].mxu0  ;;  %v1081_v60 = vpop.f32.mrb[4].mxu1 }
 0x32f   : > { %v1902_v61 = vpop.f32.mrb[5].mxu0  ;;  %1090 = vrot.lane.b32.xlu1 %v1081_v60, %s2522_s0  ;;  %v1916_v62 = vpop.f32.mrb[5].mxu1  ;;  %s482_s0 = scalar_lea.vmem %s2511_s13, %s1754_s15  ;;  %s1788_s15 = sshll.u32 %s2250_s17, 7 }
 0x330   : > { %v1348_v7 = vld [vmem:[%s482_s0] sm:$0xff]  ;;  %s2455_s25 = scalar_lea.hbm %s2512_s14, %s1788_s15  ;;  %s2153_s17 = smov [#allocation2]  }
 0x331   : > { %v1349_v8 = vmul.f32 2.0, %v1348_v7  ;;  %s2087_s28 = sshll.u32 %s2153_s17, 4  ;;  %s2088_s28 = int_to_ptr.vmem [resolvable:$false] %s2087_s28 }
 0x332   : > { %v1006_v63 = vpop.f32.mrb[6].mxu0  ;;  %s2089_s15 = scalar_lea.vmem %s2088_s28, 256  ;;  %p2090_p0 = scmp.lt.s32.totalorder %s2457_s21, %s2088_s28 }
 0x333   : > { %1086 = vrot.lane.b32.xlu0 %v1006_v63, %s2523_s27  ;;  %v1909_v0 = vpop.f32.mrb[7].mxu0  ;;  %v1780_v9 = vadd.f32 -1.0, %v1349_v8  ;;  %p2091_p1 = scmp.lt.s32.totalorder %s2089_s15, %s2083_s26 }
 0x335   : > { %p2092_p2 = por %p2091_p1, %p2090_p0 }
 0x337   : > { %p2093_p3 = pnand %p2092_p2, %p2086_p13 }
 0x3a1   : > { %v1091_v1 = vpop.permute.xlu1 %1090 }
 0x3a5   : > { %v1087_v2 = vpop.permute.xlu0 %1086 }
 0x3a6   : > { %v1093_v3 = vsel %vm755_vm1, %v931_v59, %v1087_v2 }
 0x3a7   : > { %v1094_v4 = vsel %vm489_vm0, %v1093_v3, %v1091_v1 }
 0x3a8   : > { %1930 = vmatmul.mubr.msk.f32.vlgmr.msra.gmra.mrb[8].mxu0 %vm773_vm2, %v1094_v4 }
 0x3a9   : > { %1949 = vmatprep.mubr.msk.f32.mxu0 %vm2150_vm3, %v2151_v36  ;;  %1948 = vmatpush3.msra.mxu0 %v1426_v6 }
 0x3ac   : > { %1950 = vmatmul.mubr.msk.f32.vlgmr.msra.gmra.mrb[10].mxu0 %vm1352_vm7, %v1780_v9 }
 0x47b   : > { %v1177_v11 = vpop.f32.mrb[8].mxu0 }
 0x47c   : > { %v1178_v12 = vadd.f32 %v1773_v10, %v1177_v11  ;;  %v1931_v13 = vpop.f32.mrb[9].mxu0 }
 0x47e   : > { %v1775_v14 = vadd.f32 -5.0, %v1178_v12 }
 0x47f   : > { %v1493_v29 = vpop.f32.mrb[10].mxu0 }
 0x480   : > { %v1182_v15 = vsub.f32 0.0, %v1775_v14  ;;  %v1951_v30 = vpop.f32.mrb[11].mxu0 }
 0x482   : > { %v1183_v16 = vmul.f32 1.442695, %v1182_v15 }
 0x484   : > { %2075 = vpow2.f32 %v1183_v16 }
 0x48e   : > { %v2076_v17 = vpop.eup %2075 }
 0x48f   : > { %v1185_v18 = vadd.f32 1.0, %v2076_v17 }
 0x491   : > { %2077 = vrcp.f32 %v1185_v18 }
 0x49b   : > { %v2078_v19 = vpop.eup %2077 }
 0x49c   : > { %2079 = vlog2.f32 %v2078_v19 }
 0x4a6   : > { %v2080_v20 = vpop.eup %2079 }
 0x4a7   : > { %v1189_v21 = vmul.f32 0.6931472, %v2080_v20 }
 0x4a9   : > { %v1190_v22 = vmul.f32 2.3, %v1189_v21 }
 0x4ab   : > { %v1191_v23 = vmul.f32 1.442695, %v1190_v22 }
 0x4ad   : > { %2081 = vpow2.f32 %v1191_v23 }
 0x4b7   : > { %v2082_v24 = vpop.eup %2081 }
 0x4b8   : > { %v1193_v25 = vmul.f32 2.0, %v2082_v24 }
 0x4ba   : > { %v1194_v26 = vadd.f32 1e-07, %v1193_v25 }
 0x4bc   : > { %1935 = vmatmul.mubr.msk.f32.vlgmr.msra.gmra.mrb[6].mxu1 %vm1196_vm8, %v1194_v26 }
 0x4bd   : > { %1938 = vmatpush3.msk.msra.mxu1 %vm1200_vm6, %v1274_v27  ;;  %1939 = vmatprep.mubr.msk.f32.mxu1 %vm2150_vm3, %v2151_v36 }
 0x4be   : > { %1942 = vmatprep.subr.mxu1 %v2151_v36 }
 0x4c0   : > { %1940 = vmatmul.mubr.msk.f32.vlgmr.msra.gmra.mrb[8].mxu1 %vm1196_vm8, %v1194_v26 }
 0x4c1   : > { %1943 = vmatpush3.msra.mxu1 %v1351_v28  ;;  %1944 = vmatprep.mubr.msk.f32.mxu1 %vm2150_vm3, %v2151_v36 }
 0x4c2   : > { %2020 = vmatprep.subr.bf16.mxu1 %v2149_v35 }
 0x4c4   : > { %1945 = vmatmul.mubr.msk.f32.vlgmr.msra.gmra.mrb[10].mxu1 %vm1352_vm7, %v1780_v9 }
 0x4c5   : > { %1956 = vmatprep.mubr.msk.f32.mxu1 %vm2150_vm3, %v2151_v36  ;;  %2023 = vmatpush3.bf16.msk.msra.mxu1 %vm2433_vm11, %v2021_v33 }
 0x4c6   : > { %2024 = vmatprep.subr.bf16.mxu1 %v2149_v35 }
 0x58f   : > { %v1270_v37 = vpop.f32.mrb[6].mxu1 }
 0x590   : > { %v1501_v38 = vmul.f32 %v1493_v29, %v1270_v37  ;;  %v1936_v39 = vpop.f32.mrb[7].mxu1 }
 0x593   : > { %v1344_v40 = vpop.f32.mrb[8].mxu1 }
 0x594   : > { %v1498_v41 = vmul.f32 %v1493_v29, %v1344_v40  ;;  %v1941_v42 = vpop.f32.mrb[9].mxu1 }
 0x597   : > { %v1422_v45 = vpop.f32.mrb[10].mxu1 }
 0x598   : > { %v1497_v46 = vmul.f32 %v1422_v45, %v1270_v37  ;;  %v1500_v47 = vmul.f32 %v1422_v45, %v1344_v40  ;;  %v1946_v35 = vpop.f32.mrb[11].mxu1 }
 0x59a   : > { %v1499_v49 = vsub.f32 %v1497_v46, %v1498_v41  ;;  %v1502_v50 = vadd.f32 %v1501_v38, %v1500_v47 }
 0x59c   : > { %1957 = vmatmul.mubr.msk.f32.vlgmr.msra.gmra.mrb[12].mxu1 %vm1507_vm12, %v1502_v50 }
 0x59d   : > { %2027 = vmatpush3.bf16.msk.msra.mxu1 %vm2433_vm11, %v2025_v48  ;;  %1963 = vmatprep.mubr.msk.f32.mxu1 %vm2150_vm3, %v2151_v36 }
 0x5a4   : > { %1964 = vmatmul.mubr.msk.f32.vlgmr.msra.gmra.mrb[12].mxu1 %vm1507_vm12, %v1499_v49 }
 0x677   : > { %v1657_v51 = vpop.f32.mrb[12].mxu1 }
 0x678   : > { %1661 = vst.msk [vmem:[%s473_s20] sm:$0xff] %vm1352_vm7, %v1657_v51  ;;  %v1965_v36 = vpop.f32.mrb[13].mxu1 }
 0x679   : > { %2096 = shalt.err (!%p2093_p3)
}
 0x67a   : > { %s2097_s22 = scalar_lea.hbm %s2455_s25, 128  ;;  %s2101_s27 = scalar_lea.hbm %s2512_s14, 256 }
 0x67b   : > { %p2098_p4 = scmp.ne.s32.totalorder %s2455_s25, %s2097_s22  ;;  %p2102_p9 = scmp.lt.u32.totalorder %s2455_s25, %s2512_s14 }
 0x67c   : > { %p2103_p10 = scmp.lt.u32.totalorder %s2101_s27, %s2097_s22  ;;  %p2105_p12 = scmp.lt.u32.totalorder %s2097_s22, %s2455_s25 }
 0x67d   : > { %p2099_p7 = pnand %p2098_p4, %p2267_p5 }
 0x67e   : > { %p2104_p11 = por %p2103_p10, %p2102_p9 }
 0x67f   : > { %p2100_p8 = pneg %p2099_p7 }
 0x680   : > { %p2106_p13 = por %p2105_p12, %p2104_p11 }
 0x682   : > { %p2107_p0 = pnand %p2106_p13, %p2100_p8 }
 0x684   : > { %2110 = shalt.err (!%p2107_p0)
}
 0x685   : > { %2030 = dma.vmem_to_hbm [thread:$0]  (%p2267_p5), %s2457_s21, 128, %s2455_s25, %s1663_s18  }
 0x686 PF: > { %p2036_p1 = scmp.ge.s32.totalorder %s2145_s16, 2  ;;  %s1688_s26 = sand.u32 1, %s2133_s29  }
 0x687   : > { %s1689_s15 = scalar_lea.sflag [#allocation3], %s1688_s26 }
 0x688   : > { %p2033_p2 = pnand %p2036_p1, %p2271_p6 }
 0x68a   : > { %2128 = dma.done.wait (!%p2033_p2), %s1689_s15, 128  }
 0x68b   : > { %2130 = vsyncadd (!%p2033_p2), %s1689_s15, 4294967168  ;;  %s2526_s22 = sld [smem:[#allocation5_spill]]  ;;  %s2527_s15 = sld [smem:[#allocation6_spill]] }
 0x68c   : > { %p24_p3 = scmp.ge.s32.totalorder %s2254_s19, 4   ;;  %s2528_s29 = smov %s2137_s30 }
 0x68d   : > { %s2530_s16 = smov %s2254_s19 }
 0x68e   :  { %26 = sbr.rel (!%p24_p3) target bundleno = 5 (0x5), region = 118 }
 0x691   : > { %s2529_s30 = smov %s2526_s22 }
 0x695   :  { %1694 = vsyncpa [#allocation3], 1 }
 0x696   :  { %1696 = vsyncpa [#allocation3 + $0x1], 1 }

</bundles_post_ra>
